<compile_context>
chip_gen: v7x
topology: tpu7x:2x2x1
jax: 0.10.0
libtpu: 0.0.40
codegen_flags: <defaults>
</compile_context>

<pallas_src>
import numpy as np
import jax
import jax.numpy as jnp
from jax.experimental import pallas as pl
from jax.experimental.pallas import tpu as pltpu

D_PAD = 128  # lane-dense padded hidden / head width


def _sinusoid_table(n_position, d_hid):
    """Exact replica of PositionalEncoding._get_sinusoid_encoding_table."""
    def angle_vec(pos):
        return [pos / np.power(10000, 2 * (j // 2) / d_hid) for j in range(d_hid)]
    tbl = np.array([angle_vec(p) for p in range(n_position)], dtype=np.float64)
    tbl[:, 0::2] = np.sin(tbl[:, 0::2])
    tbl[:, 1::2] = np.cos(tbl[:, 1::2])
    return tbl[None].astype(np.float32)  # (1, n_position, d_hid)


def _make_encoder_kernel(B, L, D, Dp, eps):
    # Python floats only: closing over jnp scalars would be "captured constants".
    inv_d = 1.0 / D
    BL = B * L

    def encoder_kernel(x_ref, pos_ref, bias_ref, wqkv_ref, wfc_ref, ln_ref, o_ref):
        # ----- embedding + positional encoding (padded cols stay exactly 0) -----
        x = x_ref[...] + pos_ref[...]                        # (B, L, Dp)
        x = x.reshape(BL, Dp)                                # leading-dim merge: free

        ln = ln_ref[...]                                     # (4, Dp): g1, b1, g2, b2
        g1, b1, g2, b2 = ln[0:1], ln[1:2], ln[2:3], ln[3:4]  # (1, Dp) each

        # ----- LayerNorm #1 (Encoder.layer_norm); E[x^2]-mu^2 form.
        # Pad cols of x are exact zeros (contribute 0 to both sums) and the pad cols of
        # g1/b1 are zero, so padded outputs are exactly 0. -----
        mu = jnp.sum(x, axis=-1, keepdims=True) * inv_d
        var = jnp.sum(x * x, axis=-1, keepdims=True) * inv_d - mu * mu
        x_ln = (x - mu) * jax.lax.rsqrt(var + eps) * g1 + b1

        residual = x_ln                                      # residual kept in f32

        # ----- fused Q|K|V projection (bf16 MXU operands, f32 accumulation).
        # 1/sqrt(d_k) is pre-folded into the stored Q weight. -----
        qkv = jnp.dot(x_ln.astype(jnp.bfloat16), wqkv_ref[...],
                      preferred_element_type=jnp.float32)    # (BL, 3*Dp) f32
        q = qkv[:, 0 * Dp:1 * Dp].astype(jnp.bfloat16)       # lane-aligned slices
        k = qkv[:, 1 * Dp:2 * Dp].astype(jnp.bfloat16)
        v = qkv[:, 2 * Dp:3 * Dp].astype(jnp.bfloat16)

        # ----- merged-batch scaled dot-product attention: one (BL, BL) scores matmul;
        # the additive bias masks cross-batch pairs and padded keys (-1e9). -----
        scores = jax.lax.dot_general(q, k, (((1,), (1,)), ((), ())),
                                     preferred_element_type=jnp.float32)  # (BL, BL)
        scores = scores + bias_ref[...]
        scores = scores - jnp.max(scores, axis=-1, keepdims=True)
        p = jnp.exp(scores)
        p = p * pl.reciprocal(jnp.sum(p, axis=-1, keepdims=True), approx=True)
        ctx = jnp.dot(p.astype(jnp.bfloat16), v,
                      preferred_element_type=jnp.float32)    # (BL, Dp)

        # ----- output projection + residual (padded cols stay 0) -----
        proj = jnp.dot(ctx.astype(jnp.bfloat16), wfc_ref[...],
                       preferred_element_type=jnp.float32)   # (BL, Dp)
        out = proj + residual

        # ----- LayerNorm #2 (SelfAttention.layer_norm) -----
        mu2 = jnp.sum(out, axis=-1, keepdims=True) * inv_d
        var2 = jnp.sum(out * out, axis=-1, keepdims=True) * inv_d - mu2 * mu2
        o_ref[...] = (out - mu2) * jax.lax.rsqrt(var2 + eps) * g2 + b2

    return encoder_kernel


def prepare_encoder_params(raw, *, d_k, d_v):
    """One-time precompute: pad to lane width, fuse QKV, fold 1/sqrt(d_k), pack LN params,
    and cast the matmul weights to bf16 (MXU-native on v5e/v6e/v7x; halves weight DMA)."""
    D = raw["embedding"].shape[1]
    V = raw["embedding"].shape[0]
    n_position = raw["pos_table"].shape[1]
    Dp = D_PAD
    temp = float(d_k) ** 0.5

    emb_pad = jnp.zeros((V, Dp), jnp.float32).at[:, :D].set(raw["embedding"])
    pos_pad = jnp.zeros((n_position, Dp), jnp.float32).at[:, :D].set(raw["pos_table"][0])

    wqkv = (jnp.zeros((Dp, 3 * Dp), jnp.float32)
            .at[:D, 0:d_k].set(raw["wq"] / temp)            # scale folded into Wq
            .at[:D, Dp:Dp + d_k].set(raw["wk"])
            .at[:D, 2 * Dp:2 * Dp + d_v].set(raw["wv"]))
    wfc = jnp.zeros((Dp, Dp), jnp.float32).at[:d_v, :D].set(raw["wfc"])

    ln = (jnp.zeros((4, Dp), jnp.float32)
          .at[0, :D].set(raw["ln1_g"][0]).at[1, :D].set(raw["ln1_b"][0])
          .at[2, :D].set(raw["ln2_g"][0]).at[3, :D].set(raw["ln2_b"][0]))

    return {"emb_pad": emb_pad, "pos_pad": pos_pad,
            "wqkv": wqkv.astype(jnp.bfloat16),   # bf16 MXU weights (padded zeros stay 0)
            "wfc": wfc.astype(jnp.bfloat16),
            "ln": ln, "d_model": D}


def encoder_forward(src_seq, mask, prep):
    """src_seq: (B, L) int32, mask: (B, 1, L) int32 -> (B, L, d_model) float32."""
    B, L = src_seq.shape
    D = prep["d_model"]
    Dp = D_PAD
    BL = B * L

    # Glue (plain JAX): embedding gather in padded space + positional-table slice.
    x = jnp.take(prep["emb_pad"], src_seq, axis=0)          # (B, L, Dp)
    pos = prep["pos_pad"][None, :L, :]                      # (1, L, Dp)

    # Additive attention bias (f32): 0 for same-batch valid keys, -1e9 otherwise.
    # Masks padded keys exactly like the reference, plus the cross-batch pairs
    # introduced by the merged-batch (BL x BL) attention matmul.
    row_b = jnp.arange(BL, dtype=jnp.int32)[:, None] // L
    col_b = jnp.arange(BL, dtype=jnp.int32)[None, :] // L
    key_valid = (mask[:, 0, :].reshape(BL) != 0)[None, :]
    attn_bias = jnp.where((row_b == col_b) & key_valid, 0.0, -1e9).astype(jnp.float32)

    kernel = _make_encoder_kernel(B, L, D, Dp, eps=1e-6)

    grid_spec = pltpu.PrefetchScalarGridSpec(
        num_scalar_prefetch=0,
        grid=(1,),  # single invocation: whole batch in one kernel step
        in_specs=[
            pl.BlockSpec((B, L, Dp), lambda i: (0, 0, 0)),       # x (padded)
            pl.BlockSpec((1, L, Dp), lambda i: (0, 0, 0)),       # pos-enc slice (padded)
            pl.BlockSpec((BL, BL), lambda i: (0, 0)),            # additive attention bias
            pl.BlockSpec((Dp, 3 * Dp), lambda i: (0, 0)),        # fused Wq|Wk|Wv (bf16)
            pl.BlockSpec((Dp, Dp), lambda i: (0, 0)),            # Wfc (bf16)
            pl.BlockSpec((4, Dp), lambda i: (0, 0)),             # packed LN gammas/betas
        ],
        out_specs=pl.BlockSpec((BL, Dp), lambda i: (0, 0)),      # lane-dense output block
    )

    out_pad = pl.pallas_call(
        kernel,
        out_shape=jax.ShapeDtypeStruct((BL, Dp), jnp.float32),
        grid_spec=grid_spec,
        compiler_params=pltpu.CompilerParams(dimension_semantics=("arbitrary",)),
    )(x, pos, attn_bias, prep["wqkv"], prep["wfc"], prep["ln"])

    # TODO(synk): if the downstream consumer can operate in the padded (Dp=128) space,
    # skip this slice (it is a separate XLA copy pass over HBM).
    return out_pad.reshape(B, L, Dp)[:, :, :D]


def reference_forward(src_seq, mask, params, *, d_k):
    """Pure-JAX f32 reference mirroring the PyTorch forward (eval mode), unpadded."""
    emb = params["embedding"]
    L = src_seq.shape[1]
    x = jnp.take(emb, src_seq, axis=0) + params["pos_table"][:, :L, :]
    mu = jnp.mean(x, -1, keepdims=True)
    var = jnp.mean((x - mu) ** 2, -1, keepdims=True)
    x = (x - mu) / jnp.sqrt(var + 1e-6) * params["ln1_g"][0] + params["ln1_b"][0]
    residual = x
    q = x @ params["wq"]
    k = x @ params["wk"]
    v = x @ params["wv"]
    attn = (q / (float(d_k) ** 0.5)) @ jnp.swapaxes(k, 1, 2)
    attn = jnp.where(mask == 0, -1e9, attn)
    attn = jax.nn.softmax(attn, axis=-1)
    out = attn @ v
    out = out @ params["wfc"] + residual
    mu2 = jnp.mean(out, -1, keepdims=True)
    var2 = jnp.mean((out - mu2) ** 2, -1, keepdims=True)
    return (out - mu2) / jnp.sqrt(var2 + 1e-6) * params["ln2_g"][0] + params["ln2_b"][0]


if __name__ == "__main__":
    # Small shapes consistent with the module.
    n_src_vocab = 50
    d_model = 32
    n_position = 200
    d_k = 64
    d_v = 64
    pad_idx = 0
    B, L = 2, 8

    key = jax.random.PRNGKey(0)
    keys = jax.random.split(key, 10)

    embedding = 0.1 * jax.random.normal(keys[0], (n_src_vocab, d_model), jnp.float32)
    embedding = embedding.at[pad_idx].set(0.0)  # padding_idx row = 0

    raw_params = {
        "embedding": embedding,
        "pos_table": jnp.asarray(_sinusoid_table(n_position, d_model)),
        # nn.Linear(d_in, d_out, bias=False).weight has shape (d_out, d_in);
        # we store the transpose (d_in, d_out) so the kernel computes x @ W.
        "wq": 0.1 * jax.random.normal(keys[1], (d_model, d_k), jnp.float32),
        "wk": 0.1 * jax.random.normal(keys[2], (d_model, d_k), jnp.float32),
        "wv": 0.1 * jax.random.normal(keys[3], (d_model, d_v), jnp.float32),
        "wfc": 0.1 * jax.random.normal(keys[4], (d_v, d_model), jnp.float32),
        "ln1_g": 1.0 + 0.05 * jax.random.normal(keys[5], (1, d_model), jnp.float32),
        "ln1_b": 0.05 * jax.random.normal(keys[6], (1, d_model), jnp.float32),
        "ln2_g": 1.0 + 0.05 * jax.random.normal(keys[7], (1, d_model), jnp.float32),
        "ln2_b": 0.05 * jax.random.normal(keys[8], (1, d_model), jnp.float32),
    }

    # One-time parameter preparation (padding / fusion / scale folding / bf16 weights).
    prep = prepare_encoder_params(raw_params, d_k=d_k, d_v=d_v)

    # Token ids with some padding at the tail of each sequence.
    src_seq = jax.random.randint(keys[9], (B, L), 1, n_src_vocab, dtype=jnp.int32)
    src_seq = src_seq.at[0, L - 2:].set(pad_idx)
    src_seq = src_seq.at[1, L - 1:].set(pad_idx)
    mask = (src_seq != pad_idx).astype(jnp.int32)[:, None, :]   # (B, 1, L)

    out = encoder_forward(src_seq, mask, prep)
    out = jax.block_until_ready(out)

    ref = reference_forward(src_seq, mask, raw_params, d_k=d_k)
    # Tolerance accommodates (a) bf16 MXU operands with f32 accumulation (reviewer-requested;
    # ~0.2-1% relative rounding through three matmuls) and (b) the EUP approximate reciprocal
    # in the softmax denominator.  The f32/exact variant matches the reference at 1e-4.
    np.testing.assert_allclose(np.asarray(out), np.asarray(ref), rtol=4e-2, atol=4e-2)

    print("KERNEL_OK")
</pallas_src>

<mosaic_0001>
module attributes {stable_mosaic.version = 11 : i64} {
  func.func @encoder_kernel(%arg0: i32, %arg1: memref<2x8x128xf32, #tpu.memory_space<vmem>>, %arg2: memref<1x8x128xf32, #tpu.memory_space<vmem>>, %arg3: memref<16x16xf32, #tpu.memory_space<vmem>>, %arg4: memref<128x384xbf16, #tpu.memory_space<vmem>>, %arg5: memref<128x128xbf16, #tpu.memory_space<vmem>>, %arg6: memref<4x128xf32, #tpu.memory_space<vmem>>, %arg7: memref<16x128xf32, #tpu.memory_space<vmem>>) attributes {dimension_semantics = [#tpu.dimension_semantics<arbitrary>], iteration_bounds = array<i64: 1>, scalar_prefetch = 0 : i64, scratch_operands = 0 : i64, tpu.core_type = #tpu.core_type<tc>, window_params = [{pipeline_mode = #tpu.pipeline_mode<synchronous>, transform_indices = @transform_0, window_bounds = array<i64: 2, 8, 128>}, {pipeline_mode = #tpu.pipeline_mode<synchronous>, transform_indices = @transform_1, window_bounds = array<i64: 1, 8, 128>}, {pipeline_mode = #tpu.pipeline_mode<synchronous>, transform_indices = @transform_2, window_bounds = array<i64: 16, 16>}, {pipeline_mode = #tpu.pipeline_mode<synchronous>, transform_indices = @transform_3, window_bounds = array<i64: 128, 384>}, {pipeline_mode = #tpu.pipeline_mode<synchronous>, transform_indices = @transform_4, window_bounds = array<i64: 128, 128>}, {pipeline_mode = #tpu.pipeline_mode<synchronous>, transform_indices = @transform_5, window_bounds = array<i64: 4, 128>}, {pipeline_mode = #tpu.pipeline_mode<synchronous>, transform_indices = @transform_6, window_bounds = array<i64: 16, 128>}]} {
    %c0 = arith.constant 0 : index
    %c0_0 = arith.constant 0 : index
    %c0_1 = arith.constant 0 : index
    %0 = vector.load %arg1[%c0, %c0_0, %c0_1] : memref<2x8x128xf32, #tpu.memory_space<vmem>>, vector<2x8x128xf32>
    %c0_2 = arith.constant 0 : index
    %c0_3 = arith.constant 0 : index
    %c0_4 = arith.constant 0 : index
    %1 = vector.load %arg2[%c0_2, %c0_3, %c0_4] : memref<1x8x128xf32, #tpu.memory_space<vmem>>, vector<1x8x128xf32>
    %2 = vector.broadcast %1 : vector<1x8x128xf32> to vector<2x8x128xf32>
    %3 = arith.addf %0, %2 : vector<2x8x128xf32>
    %4 = vector.shape_cast %3 : vector<2x8x128xf32> to vector<16x128xf32>
    %c0_5 = arith.constant 0 : index
    %c0_6 = arith.constant 0 : index
    %5 = vector.load %arg6[%c0_5, %c0_6] : memref<4x128xf32, #tpu.memory_space<vmem>>, vector<4x128xf32>
    %6 = vector.extract_strided_slice %5 {offsets = [0, 0], sizes = [1, 128], strides = [1, 1]} : vector<4x128xf32> to vector<1x128xf32>
    %7 = vector.extract_strided_slice %5 {offsets = [1, 0], sizes = [1, 128], strides = [1, 1]} : vector<4x128xf32> to vector<1x128xf32>
    %8 = vector.extract_strided_slice %5 {offsets = [2, 0], sizes = [1, 128], strides = [1, 1]} : vector<4x128xf32> to vector<1x128xf32>
    %9 = vector.extract_strided_slice %5 {offsets = [3, 0], sizes = [1, 128], strides = [1, 1]} : vector<4x128xf32> to vector<1x128xf32>
    %cst = arith.constant dense<0.000000e+00> : vector<16xf32>
    %10 = vector.multi_reduction <add>, %4, %cst [1] : vector<16x128xf32> to vector<16xf32>
    %11 = vector.shape_cast %10 : vector<16xf32> to vector<16x1xf32>
    %cst_7 = arith.constant 3.125000e-02 : f32
    %12 = vector.broadcast %cst_7 : f32 to vector<16x1xf32>
    %13 = arith.mulf %11, %12 : vector<16x1xf32>
    %14 = arith.mulf %4, %4 : vector<16x128xf32>
    %cst_8 = arith.constant dense<0.000000e+00> : vector<16xf32>
    %15 = vector.multi_reduction <add>, %14, %cst_8 [1] : vector<16x128xf32> to vector<16xf32>
    %16 = vector.shape_cast %15 : vector<16xf32> to vector<16x1xf32>
    %cst_9 = arith.constant 3.125000e-02 : f32
    %17 = vector.broadcast %cst_9 : f32 to vector<16x1xf32>
    %18 = arith.mulf %16, %17 : vector<16x1xf32>
    %19 = arith.mulf %13, %13 : vector<16x1xf32>
    %20 = arith.subf %18, %19 : vector<16x1xf32>
    %21 = vector.broadcast %13 : vector<16x1xf32> to vector<16x128xf32>
    %22 = arith.subf %4, %21 : vector<16x128xf32>
    %cst_10 = arith.constant 9.99999997E-7 : f32
    %23 = vector.broadcast %cst_10 : f32 to vector<16x1xf32>
    %24 = arith.addf %20, %23 : vector<16x1xf32>
    %25 = math.rsqrt %24 : vector<16x1xf32>
    %26 = vector.broadcast %25 : vector<16x1xf32> to vector<16x128xf32>
    %27 = arith.mulf %22, %26 : vector<16x128xf32>
    %28 = vector.broadcast %6 : vector<1x128xf32> to vector<16x128xf32>
    %29 = arith.mulf %27, %28 : vector<16x128xf32>
    %30 = vector.broadcast %7 : vector<1x128xf32> to vector<16x128xf32>
    %31 = arith.addf %29, %30 : vector<16x128xf32>
    %32 = arith.truncf %31 : vector<16x128xf32> to vector<16x128xbf16>
    %c0_11 = arith.constant 0 : index
    %c0_12 = arith.constant 0 : index
    %33 = vector.load %arg4[%c0_11, %c0_12] : memref<128x384xbf16, #tpu.memory_space<vmem>>, vector<128x384xbf16>
    %cst_13 = arith.constant dense<0.000000e+00> : vector<16x384xf32>
    %34 = tpu.matmul %32, %33, %cst_13 {dimension_numbers = #tpu.dot_dimension_numbers<[1], [0], [0], [1], [0, 0, 1, 1], [], []>} : vector<16x128xbf16>, vector<128x384xbf16>, vector<16x384xf32> -> vector<16x384xf32>
    %35 = vector.extract_strided_slice %34 {offsets = [0, 0], sizes = [16, 128], strides = [1, 1]} : vector<16x384xf32> to vector<16x128xf32>
    %36 = arith.truncf %35 : vector<16x128xf32> to vector<16x128xbf16>
    %37 = vector.extract_strided_slice %34 {offsets = [0, 128], sizes = [16, 128], strides = [1, 1]} : vector<16x384xf32> to vector<16x128xf32>
    %38 = arith.truncf %37 : vector<16x128xf32> to vector<16x128xbf16>
    %39 = vector.extract_strided_slice %34 {offsets = [0, 256], sizes = [16, 128], strides = [1, 1]} : vector<16x384xf32> to vector<16x128xf32>
    %40 = arith.truncf %39 : vector<16x128xf32> to vector<16x128xbf16>
    %cst_14 = arith.constant dense<0.000000e+00> : vector<16x16xf32>
    %41 = tpu.matmul %36, %38, %cst_14 {dimension_numbers = #tpu.dot_dimension_numbers<[1], [1], [0], [0], [0, 0, 1, 0], [], []>} : vector<16x128xbf16>, vector<16x128xbf16>, vector<16x16xf32> -> vector<16x16xf32>
    %c0_15 = arith.constant 0 : index
    %c0_16 = arith.constant 0 : index
    %42 = vector.load %arg3[%c0_15, %c0_16] : memref<16x16xf32, #tpu.memory_space<vmem>>, vector<16x16xf32>
    %43 = arith.addf %41, %42 : vector<16x16xf32>
    %cst_17 = arith.constant dense<0xFF800000> : vector<16xf32>
    %44 = vector.multi_reduction <maximumf>, %43, %cst_17 [1] : vector<16x16xf32> to vector<16xf32>
    %45 = vector.shape_cast %44 : vector<16xf32> to vector<16x1xf32>
    %46 = vector.broadcast %45 : vector<16x1xf32> to vector<16x16xf32>
    %47 = arith.subf %43, %46 : vector<16x16xf32>
    %48 = math.exp %47 : vector<16x16xf32>
    %cst_18 = arith.constant dense<0.000000e+00> : vector<16xf32>
    %49 = vector.multi_reduction <add>, %48, %cst_18 [1] : vector<16x16xf32> to vector<16xf32>
    %50 = vector.shape_cast %49 : vector<16xf32> to vector<16x1xf32>
    %51 = tpu.reciprocal %50 {approx = true} : vector<16x1xf32> -> vector<16x1xf32>
    %52 = vector.broadcast %51 : vector<16x1xf32> to vector<16x16xf32>
    %53 = arith.mulf %48, %52 : vector<16x16xf32>
    %54 = arith.truncf %53 : vector<16x16xf32> to vector<16x16xbf16>
    %cst_19 = arith.constant dense<0.000000e+00> : vector<16x128xf32>
    %55 = tpu.matmul %54, %40, %cst_19 {dimension_numbers = #tpu.dot_dimension_numbers<[1], [0], [0], [1], [0, 0, 1, 1], [], []>} : vector<16x16xbf16>, vector<16x128xbf16>, vector<16x128xf32> -> vector<16x128xf32>
    %56 = arith.truncf %55 : vector<16x128xf32> to vector<16x128xbf16>
    %c0_20 = arith.constant 0 : index
    %c0_21 = arith.constant 0 : index
    %57 = vector.load %arg5[%c0_20, %c0_21] : memref<128x128xbf16, #tpu.memory_space<vmem>>, vector<128x128xbf16>
    %cst_22 = arith.constant dense<0.000000e+00> : vector<16x128xf32>
    %58 = tpu.matmul %56, %57, %cst_22 {dimension_numbers = #tpu.dot_dimension_numbers<[1], [0], [0], [1], [0, 0, 1, 1], [], []>} : vector<16x128xbf16>, vector<128x128xbf16>, vector<16x128xf32> -> vector<16x128xf32>
    %59 = arith.addf %58, %31 : vector<16x128xf32>
    %cst_23 = arith.constant dense<0.000000e+00> : vector<16xf32>
    %60 = vector.multi_reduction <add>, %59, %cst_23 [1] : vector<16x128xf32> to vector<16xf32>
    %61 = vector.shape_cast %60 : vector<16xf32> to vector<16x1xf32>
    %cst_24 = arith.constant 3.125000e-02 : f32
    %62 = vector.broadcast %cst_24 : f32 to vector<16x1xf32>
    %63 = arith.mulf %61, %62 : vector<16x1xf32>
    %64 = arith.mulf %59, %59 : vector<16x128xf32>
    %cst_25 = arith.constant dense<0.000000e+00> : vector<16xf32>
    %65 = vector.multi_reduction <add>, %64, %cst_25 [1] : vector<16x128xf32> to vector<16xf32>
    %66 = vector.shape_cast %65 : vector<16xf32> to vector<16x1xf32>
    %cst_26 = arith.constant 3.125000e-02 : f32
    %67 = vector.broadcast %cst_26 : f32 to vector<16x1xf32>
    %68 = arith.mulf %66, %67 : vector<16x1xf32>
    %69 = arith.mulf %63, %63 : vector<16x1xf32>
    %70 = arith.subf %68, %69 : vector<16x1xf32>
    %71 = vector.broadcast %63 : vector<16x1xf32> to vector<16x128xf32>
    %72 = arith.subf %59, %71 : vector<16x128xf32>
    %cst_27 = arith.constant 9.99999997E-7 : f32
    %73 = vector.broadcast %cst_27 : f32 to vector<16x1xf32>
    %74 = arith.addf %70, %73 : vector<16x1xf32>
    %75 = math.rsqrt %74 : vector<16x1xf32>
    %76 = vector.broadcast %75 : vector<16x1xf32> to vector<16x128xf32>
    %77 = arith.mulf %72, %76 : vector<16x128xf32>
    %78 = vector.broadcast %8 : vector<1x128xf32> to vector<16x128xf32>
    %79 = arith.mulf %77, %78 : vector<16x128xf32>
    %80 = vector.broadcast %9 : vector<1x128xf32> to vector<16x128xf32>
    %81 = arith.addf %79, %80 : vector<16x128xf32>
    %c0_28 = arith.constant 0 : index
    %c0_29 = arith.constant 0 : index
    %82 = vector.load %arg7[%c0_28, %c0_29] : memref<16x128xf32, #tpu.memory_space<vmem>>, vector<16x128xf32>
    tpu.vector_store %arg7[%c0_28, %c0_29], %81 {strides = array<i32>} : memref<16x128xf32, #tpu.memory_space<vmem>>, vector<16x128xf32>,
    return
  }
  func.func @transform_0(%arg0: i32) -> (i32, i32, i32) {
    %c0_i32 = arith.constant 0 : i32
    %c0_i32_0 = arith.constant 0 : i32
    %c0_i32_1 = arith.constant 0 : i32
    %c0_i32_2 = arith.constant 0 : i32
    return %c0_i32, %c0_i32_0, %c0_i32_1 : i32, i32, i32
  }
  func.func @transform_1(%arg0: i32) -> (i32, i32, i32) {
    %c0_i32 = arith.constant 0 : i32
    %c0_i32_0 = arith.constant 0 : i32
    %c0_i32_1 = arith.constant 0 : i32
    %c0_i32_2 = arith.constant 0 : i32
    return %c0_i32, %c0_i32_0, %c0_i32_1 : i32, i32, i32
  }
  func.func @transform_2(%arg0: i32) -> (i32, i32) {
    %c0_i32 = arith.constant 0 : i32
    %c0_i32_0 = arith.constant 0 : i32
    %c0_i32_1 = arith.constant 0 : i32
    return %c0_i32, %c0_i32_0 : i32, i32
  }
  func.func @transform_3(%arg0: i32) -> (i32, i32) {
    %c0_i32 = arith.constant 0 : i32
    %c0_i32_0 = arith.constant 0 : i32
    %c0_i32_1 = arith.constant 0 : i32
    return %c0_i32, %c0_i32_0 : i32, i32
  }
  func.func @transform_4(%arg0: i32) -> (i32, i32) {
    %c0_i32 = arith.constant 0 : i32
    %c0_i32_0 = arith.constant 0 : i32
    %c0_i32_1 = arith.constant 0 : i32
    return %c0_i32, %c0_i32_0 : i32, i32
  }
  func.func @transform_5(%arg0: i32) -> (i32, i32) {
    %c0_i32 = arith.constant 0 : i32
    %c0_i32_0 = arith.constant 0 : i32
    %c0_i32_1 = arith.constant 0 : i32
    return %c0_i32, %c0_i32_0 : i32, i32
  }
  func.func @transform_6(%arg0: i32) -> (i32, i32) {
    %c0_i32 = arith.constant 0 : i32
    %c0_i32_0 = arith.constant 0 : i32
    %c0_i32_1 = arith.constant 0 : i32
    return %c0_i32, %c0_i32_0 : i32, i32
  }
}

</mosaic_0001>

<bundles_post_ra>
// kernel: tpu_custom_call.1
= control target key start
LH: loop header
LB: loop body
LE: loop exit
PB: predicated region body
PF: predicated region fallthrough
CT: control target
= control target key end

     0   :  { %11 = vsyncpa [#allocation3], 0  ;;  %s1181_s0 = inlined_call_operand.hbm [shape: f32[2,8,128], index: 0, kind: input, shape index: {}]   ;;  %s1182_s1 = inlined_call_operand.hbm [shape: f32[1,8,128], index: 1, kind: input, shape index: {}]   ;;  %s1183_s2 = inlined_call_operand.hbm [shape: f32[16,16], index: 2, kind: input, shape index: {}]   ;;  %s1184_s3 = inlined_call_operand.hbm [shape: bf16[128,384], index: 3, kind: input, shape index: {}]   ;;  %s1185_s4 = inlined_call_operand.hbm [shape: bf16[128,128], index: 4, kind: input, shape index: {}]   ;;  %s1186_s5 = inlined_call_operand.vmem [shape: f32[4,128], index: 5, kind: input, shape index: {}]   ;;  %s1187_s6 = inlined_call_operand.hbm [shape: f32[16,128], index: 6, kind: output, shape index: {}]  }
   0x1   :  { %12 = vsyncpa [#allocation6], 0 }
   0x2   :  { %13 = vsyncpa [#allocation9], 0 }
   0x3   :  { %14 = vsyncpa [#allocation4], 0  ;;  %s977_s21 = smov [#allocation5]   ;;  %s978_s23 = smov [#allocation8]  }
   0x4   :  { %s33_s22 = sshll.u32 %s977_s21, 4  ;;  %s54_s24 = sshll.u32 %s978_s23, 4  ;;  %s34_s22 = int_to_ptr.vmem [resolvable:$true] %s33_s22  ;;  %s1027_s24 = int_to_ptr.vmem [resolvable:$true] %s54_s24 }
   0x5   :  { %s837_s27 = scalar_lea.hbm %s1182_s1, 128 }
   0x6   :  { %p838_p0 = scmp.ne.s32.totalorder %s1182_s1, %s837_s27  ;;  %p841_p1 = scmp.lt.u32.totalorder %s837_s27, %s1182_s1 }
   0x8   :  { %p843_p2 = pnand %p841_p1, %p838_p0 }
   0xa   :  { %846 = shalt.err (!%p843_p2)
}
   0xb   :  { %s847_s8 = scalar_lea.vmem %s34_s22, 128  ;;  %p852_p4 = scmp.lt.s32.totalorder %s34_s22, %s34_s22 }
   0xc   :  { %p848_p3 = scmp.ne.s32.totalorder %s34_s22, %s847_s8  ;;  %p853_p5 = scmp.lt.s32.totalorder %s847_s8, %s847_s8 }
   0xe   :  { %p854_p6 = por %p853_p5, %p852_p4 }
  0x10   :  { %p855_p7 = pnand %p854_p6, %p848_p3 }
  0x12   :  { %858 = shalt.err (!%p855_p7)
}
  0x13   :  { %36 = dma.hbm_to_vmem [thread:$0]  %s1182_s1, 128, %s34_s22, [#allocation6]  }
  0x14   :  { %s859_s13 = scalar_lea.hbm %s1184_s3, 3072 }
  0x15   :  { %p860_p8 = scmp.ne.s32.totalorder %s1184_s3, %s859_s13  ;;  %p863_p9 = scmp.lt.u32.totalorder %s859_s13, %s1184_s3 }
  0x17   :  { %p865_p10 = pnand %p863_p9, %p860_p8 }
  0x19   :  { %868 = shalt.err (!%p865_p10)
}
  0x1a   :  { %s869_s18 = scalar_lea.vmem %s1027_s24, 3072  ;;  %p874_p12 = scmp.lt.s32.totalorder %s1027_s24, %s1027_s24 }
  0x1b   :  { %p870_p11 = scmp.ne.s32.totalorder %s1027_s24, %s869_s18  ;;  %p875_p13 = scmp.lt.s32.totalorder %s869_s18, %s869_s18 }
  0x1d   :  { %p876_p0 = por %p875_p13, %p874_p12 }
  0x1f   :  { %p877_p1 = pnand %p876_p0, %p870_p11 }
  0x21   :  { %880 = shalt.err (!%p877_p1)
}
  0x22   :  { %s979_s1 = smov 192   ;;  %s980_s19 = smov 12  }
  0x23   :  { %60 = dma.hbm_to_vmem [thread:$0]  %s1184_s3, 3072, %s1027_s24, [#allocation9], %s979_s1, %s979_s1, %s980_s19  }
  0x24   :  { %s981_s22 = smov [#allocation2]   ;;  %s881_s27 = scalar_lea.hbm %s1181_s0, 256 }
  0x25   :  { %s20_s23 = sshll.u32 %s981_s22, 4  ;;  %p882_p2 = scmp.ne.s32.totalorder %s1181_s0, %s881_s27  ;;  %s21_s23 = int_to_ptr.vmem [resolvable:$true] %s20_s23 }
  0x26   :  { %p885_p3 = scmp.lt.u32.totalorder %s881_s27, %s1181_s0 }
  0x28   :  { %p887_p4 = pnand %p885_p3, %p882_p2 }
  0x2a   :  { %890 = shalt.err (!%p887_p4)
}
  0x2b   :  { %s891_s8 = scalar_lea.vmem %s21_s23, 256  ;;  %p896_p6 = scmp.lt.s32.totalorder %s21_s23, %s21_s23 }
  0x2c   :  { %p892_p5 = scmp.ne.s32.totalorder %s21_s23, %s891_s8  ;;  %p897_p7 = scmp.lt.s32.totalorder %s891_s8, %s891_s8 }
  0x2e   :  { %p898_p8 = por %p897_p7, %p896_p6 }
  0x30   :  { %p899_p9 = pnand %p898_p8, %p892_p5 }
  0x32   :  { %902 = shalt.err (!%p899_p9)
}
  0x33   :  { %s982_s3 = smov 128   ;;  %s983_s24 = smov 8  }
  0x34   :  { %26 = dma.hbm_to_vmem [thread:$0]  %s1181_s0, 256, %s21_s23, [#allocation3], %s982_s3, %s982_s3, %s983_s24  }
  0x35   :  { %s984_s11 = smov [#allocation7]   ;;  %s985_s13 = smov [#allocation10]  }
  0x36   :  { %s42_s12 = sshll.u32 %s984_s11, 4  ;;  %s66_s14 = sshll.u32 %s985_s13, 4  ;;  %s43_s12 = int_to_ptr.vmem [resolvable:$true] %s42_s12  ;;  %s67_s14 = int_to_ptr.vmem [resolvable:$true] %s66_s14 }
  0x37   :  { %s903_s17 = scalar_lea.hbm %s1183_s2, 256 }
  0x38   :  { %p904_p10 = scmp.ne.s32.totalorder %s1183_s2, %s903_s17  ;;  %p907_p11 = scmp.lt.u32.totalorder %s903_s17, %s1183_s2 }
  0x3a   :  { %p909_p12 = pnand %p907_p11, %p904_p10 }
  0x3c   :  { %912 = shalt.err (!%p909_p12)
}
  0x3d   :  { %s913_s0 = scalar_lea.vmem %s43_s12, 256  ;;  %p918_p0 = scmp.lt.s32.totalorder %s43_s12, %s43_s12 }
  0x3e   :  { %p914_p13 = scmp.ne.s32.totalorder %s43_s12, %s913_s0  ;;  %p919_p1 = scmp.lt.s32.totalorder %s913_s0, %s913_s0 }
  0x40   :  { %p920_p2 = por %p919_p1, %p918_p0 }
  0x42   :  { %p921_p3 = pnand %p920_p2, %p914_p13 }
  0x44   :  { %924 = shalt.err (!%p921_p3)
}
  0x45   :  { %48 = dma.hbm_to_vmem [thread:$0]  %s1183_s2, 256, %s43_s12, [#allocation6], %s982_s3, %s982_s3, %s983_s24  }
  0x46   :  { %s925_s26 = scalar_lea.hbm %s1185_s4, 1024 }
  0x47   :  { %p926_p4 = scmp.ne.s32.totalorder %s1185_s4, %s925_s26  ;;  %p929_p5 = scmp.lt.u32.totalorder %s925_s26, %s1185_s4 }
  0x49   :  { %p931_p6 = pnand %p929_p5, %p926_p4 }
  0x4b   :  { %934 = shalt.err (!%p931_p6)
}
  0x4c   :  { %s935_s7 = scalar_lea.vmem %s67_s14, 1024  ;;  %p940_p8 = scmp.lt.s32.totalorder %s67_s14, %s67_s14 }
  0x4d   :  { %p936_p7 = scmp.ne.s32.totalorder %s67_s14, %s935_s7  ;;  %p941_p9 = scmp.lt.s32.totalorder %s935_s7, %s935_s7 }
  0x4f   :  { %p942_p10 = por %p941_p9, %p940_p8 }
  0x51   :  { %p943_p11 = pnand %p942_p10, %p936_p7 }
  0x53   :  { %946 = shalt.err (!%p943_p11)
}
  0x54   :  { %s986_s2 = smov 64   ;;  %s987_s8 = smov 4  }
  0x55   :  { %72 = dma.hbm_to_vmem [thread:$0]  %s1185_s4, 1024, %s67_s14, [#allocation9], %s986_s2, %s986_s2, %s987_s8  }
  0x56   :  { %969 = dma.done.wait [#allocation3], 256  }
  0x57   :  { %970 = vsyncadd [#allocation3], 4294967040 }
  0x58   :  { %971 = dma.done.wait [#allocation6], 384  }
  0x59   :  { %972 = vsyncadd [#allocation6], 4294966912 }
  0x5a   :  { %973 = dma.done.wait [#allocation9], 4096  }
  0x5b   :  { %974 = vsyncadd [#allocation9], 4294963200  ;;  %v988_v0 = vmov 0.0   ;;  %v91_v1 = vld [vmem:[#allocation2] sm:$0xff]  ;;  %v93_v2 = vld [vmem:[#allocation5] sm:$0xff]  ;;  %v989_v27 = vmov 0   ;;  %v123_v45 = vlaneseq }
  0x5c   :  { %714 = vmatprep.subr.bf16.mxu1 %v988_v0  ;;  %v92_v3 = vld [vmem:[#allocation2 + $0x8] sm:$0xff]  ;;  %v1101_v4 = vadd.f32 %v93_v2, %v91_v1  ;;  %v784_v10 = vld [vmem:[#allocation8 + $0x8] ss:$12 sps:$4 sm:$0xff]   ;;  %v791_v15 = vld [vmem:[#allocation8 + $0x30] ss:$12 sps:$4 sm:$0xff]   ;;  %328 = vmatprep.mubr.bf16.mxu0 %v989_v27  ;;  %vm990_vm0 = vmmov 0  }
  0x5d   :  { %v1103_v5 = vadd.f32 %v93_v2, %v92_v3  ;;  %v781_v6 = vld [vmem:[#allocation8 + $0x4] ss:$12 sps:$4 sm:$0xff]   ;;  %v783_v9 = vld [vmem:[#allocation8] ss:$12 sps:$4 sm:$0xff]   ;;  %715 = vmatpush3.bf16.msra.mxu1 %v784_v10  ;;  %v785_v11 = vld [vmem:[#allocation8 + $0x1c] ss:$12 sps:$4 sm:$0xff]   ;;  %730 = vmatprep.mubr.msk.bf16.mxu1 %vm990_vm0, %v988_v0 }
  0x5e   :  { %97 = vadd.xlane.f32.xlu0 %v1101_v4  ;;  %v103_v7 = vmul.f32 %v1101_v4, %v1101_v4  ;;  %296 = vmatprep.subr.bf16.mxu0 %v781_v6  ;;  %v787_v12 = vld [vmem:[#allocation8 + $0x18] ss:$12 sps:$4 sm:$0xff]   ;;  %v788_v13 = vld [vmem:[#allocation8 + $0x20] ss:$12 sps:$4 sm:$0xff]   ;;  %v795_v18 = vld [vmem:[#allocation8 + $0x48] ss:$12 sps:$4 sm:$0xff]  }
  0x5f   :  { %v104_v8 = vmul.f32 %v1103_v5, %v1103_v5  ;;  %297 = vmatpush1.bf16.msra.mxu0 %v783_v9  ;;  %716 = vmatprep.subr.bf16.mxu1 %v988_v0  ;;  %v789_v14 = vld [vmem:[#allocation8 + $0x34] ss:$12 sps:$4 sm:$0xff]   ;;  %v792_v16 = vld [vmem:[#allocation8 + $0x38] ss:$12 sps:$4 sm:$0xff]   ;;  %v796_v19 = vld [vmem:[#allocation8 + $0x50] ss:$12 sps:$4 sm:$0xff]  }
  0x60   :  { %105 = vadd.xlane.f32.xlu1 %v103_v7  ;;  %298 = vmatprep.subr.bf16.mxu0 %v785_v11  ;;  %v793_v17 = vld [vmem:[#allocation8 + $0x4c] ss:$12 sps:$4 sm:$0xff]   ;;  %v797_v20 = vld [vmem:[#allocation8 + $0x64] ss:$12 sps:$4 sm:$0xff]   ;;  %v800_v22 = vld [vmem:[#allocation8 + $0x68] ss:$12 sps:$4 sm:$0xff]  }
  0x61   :  { %717 = vmatpush3.bf16.msra.mxu1 %v788_v13  ;;  %v799_v21 = vld [vmem:[#allocation8 + $0x60] ss:$12 sps:$4 sm:$0xff]   ;;  %v801_v23 = vld [vmem:[#allocation8 + $0x7c] ss:$12 sps:$4 sm:$0xff]   ;;  %v803_v24 = vld [vmem:[#allocation8 + $0x78] ss:$12 sps:$4 sm:$0xff]  }
  0x62   :  { %99 = vadd.xlane.f32.xlu0 %v1103_v5  ;;  %718 = vmatprep.subr.bf16.mxu1 %v988_v0  ;;  %v804_v25 = vld [vmem:[#allocation8 + $0x80] ss:$12 sps:$4 sm:$0xff]   ;;  %v807_v28 = vld [vmem:[#allocation8 + $0x90] ss:$12 sps:$4 sm:$0xff]   ;;  %v808_v29 = vld [vmem:[#allocation8 + $0x98] ss:$12 sps:$4 sm:$0xff]  }
  0x63   :  { %299 = vmatpush1.bf16.msra.mxu0 %v787_v12  ;;  %v805_v26 = vld [vmem:[#allocation8 + $0x94] ss:$12 sps:$4 sm:$0xff]   ;;  %v809_v30 = vld [vmem:[#allocation8 + $0xac] ss:$12 sps:$4 sm:$0xff]   ;;  %v812_v32 = vld [vmem:[#allocation8 + $0xb0] ss:$12 sps:$4 sm:$0xff]  }
  0x64   :  { %107 = vadd.xlane.f32.xlu1 %v104_v8  ;;  %300 = vmatprep.subr.bf16.mxu0 %v789_v14  ;;  %v811_v31 = vld [vmem:[#allocation8 + $0xa8] ss:$12 sps:$4 sm:$0xff]   ;;  %v1122_v48 = vshrl.u32 %v123_v45, 7  ;;  %v1128_v50 = vld [vmem:[%s1186_s5] sm:$0xf]  ;;  %vm426_vm1 = vcmask 130048  }
  0x65   :  { %719 = vmatpush3.bf16.msra.mxu1 %v792_v16  ;;  %v383_v13 = vld [vmem:[#allocation7] sm:$0xff]  ;;  %s991_s5 = smov [#allocation11]  }
  0x66   :  { %720 = vmatprep.subr.bf16.mxu1 %v988_v0  ;;  %v125_v49 = vsub.s32 0, %v1122_v48  ;;  %v131_v55 = vsub.s32 1, %v1122_v48  ;;  %s645_s12 = sshll.u32 %s991_s5, 4  ;;  %s646_s12 = int_to_ptr.vmem [resolvable:$true] %s645_s12 }
  0x67   :  { %301 = vmatpush1.bf16.msra.mxu0 %v791_v15  ;;  %v384_v15 = vld [vmem:[#allocation7 + $0x8] sm:$0xff]  ;;  %s947_s13 = scalar_lea.vmem %s646_s12, 256  ;;  %p952_p13 = scmp.lt.s32.totalorder %s646_s12, %s646_s12 }
  0x68   :  { %302 = vmatprep.subr.bf16.mxu0 %v793_v17  ;;  %v126_v54 = vrot.slane %v1128_v50, %v125_v49  ;;  %v132_v60 = vrot.slane %v1128_v50, %v131_v55  ;;  %p948_p12 = scmp.ne.s32.totalorder %s646_s12, %s947_s13  ;;  %p953_p0 = scmp.lt.s32.totalorder %s947_s13, %s947_s13 }
  0x69   :  { %721 = vmatpush3.bf16.msra.mxu1 %v796_v19 }
  0x6a   :  { %722 = vmatprep.subr.bf16.mxu1 %v988_v0  ;;  %p954_p1 = por %p953_p0, %p952_p13 }
  0x6b   :  { %303 = vmatpush1.bf16.msra.mxu0 %v795_v18 }
  0x6c   :  { %304 = vmatprep.subr.bf16.mxu0 %v797_v20  ;;  %p955_p2 = pnand %p954_p1, %p948_p12 }
  0x6d   :  { %723 = vmatpush3.bf16.msra.mxu1 %v800_v22 }
  0x6e   :  { %724 = vmatprep.subr.bf16.mxu1 %v988_v0 }
  0x6f   :  { %305 = vmatpush1.bf16.msra.mxu0 %v799_v21 }
  0x70   :  { %306 = vmatprep.subr.bf16.mxu0 %v801_v23 }
  0x71   :  { %725 = vmatpush3.bf16.msra.mxu1 %v804_v25 }
  0x72   :  { %726 = vmatprep.subr.bf16.mxu1 %v988_v0 }
  0x73   :  { %307 = vmatpush1.bf16.msra.mxu0 %v803_v24 }
  0x74   :  { %308 = vmatprep.subr.bf16.mxu0 %v805_v26 }
  0x75   :  { %727 = vmatpush3.bf16.msra.mxu1 %v808_v29 }
  0x76   :  { %728 = vmatprep.subr.bf16.mxu1 %v988_v0 }
  0x77   :  { %309 = vmatpush1.bf16.msra.mxu0 %v807_v28 }
  0x78   :  { %310 = vmatprep.subr.bf16.mxu0 %v809_v30 }
  0x79   :  { %729 = vmatpush3.bf16.msra.mxu1 %v812_v32 }
  0x7a   :  { %734 = vmatprep.subr.bf16.mxu1 %v988_v0 }
  0x7b   :  { %311 = vmatpush1.bf16.msra.mxu0 %v811_v31 }
  0x7c   :  { %746 = vmatprep.subr.bf16.mxu0 %v988_v0 }
  0xeb   :  { %v98_v33 = vpop.xlane.xlu0 %97 }
  0xec   :  { %v101_v34 = vmul.f32 0.03125, %v98_v33  ;;  %v813_v33 = vld [vmem:[#allocation10] sm:$0xff]  }
  0xed   :  { %v106_v35 = vpop.xlane.xlu1 %105 }
  0xee   :  { %v111_v36 = vmul.f32 %v101_v34, %v101_v34  ;;  %v109_v37 = vmul.f32 0.03125, %v106_v35  ;;  %v115_v51 = vsub.f32 %v1101_v4, %v101_v34  ;;  %v814_v34 = vld [vmem:[#allocation10 + $0x8] sm:$0xff]   ;;  %v815_v35 = vld [vmem:[#allocation10 + $0x10] sm:$0xff]  }
  0xef   :  { %v100_v38 = vpop.xlane.xlu0 %99 }
  0xf0   :  { %v113_v39 = vsub.f32 %v109_v37, %v111_v36  ;;  %v102_v40 = vmul.f32 0.03125, %v100_v38  ;;  %v816_v36 = vld [vmem:[#allocation10 + $0x18] sm:$0xff]   ;;  %v817_v37 = vld [vmem:[#allocation10 + $0x20] sm:$0xff]   ;;  %v818_v38 = vld [vmem:[#allocation10 + $0x28] sm:$0xff]  }
  0xf1   :  { %v108_v41 = vpop.xlane.xlu1 %107 }
  0xf2   :  { %v117_v42 = vadd.f32 1e-06, %v113_v39  ;;  %v112_v43 = vmul.f32 %v102_v40, %v102_v40  ;;  %v110_v44 = vmul.f32 0.03125, %v108_v41  ;;  %v116_v56 = vsub.f32 %v1103_v5, %v102_v40  ;;  %v819_v39 = vld [vmem:[#allocation10 + $0x30] sm:$0xff]  }
  0xf4   :  { %821 = vrsqrt.f32 %v117_v42  ;;  %v114_v46 = vsub.f32 %v110_v44, %v112_v43 }
  0xf6   :  { %v118_v47 = vadd.f32 1e-06, %v114_v46 }
  0xf8   :  { %823 = vrsqrt.f32 %v118_v47  ;;  %v820_v47 = vld [vmem:[#allocation10 + $0x38] sm:$0xff]  }
  0xfe   :  { %v822_v52 = vpop.eup %821 }
  0xff   :  { %v121_v53 = vmul.f32 %v822_v52, %v115_v51 }
 0x101   :  { %v127_v59 = vmul.f32 %v126_v54, %v121_v53 }
 0x102   :  { %v824_v57 = vpop.eup %823 }
 0x103   :  { %v122_v58 = vmul.f32 %v824_v57, %v116_v56  ;;  %v1135_v62 = vadd.f32 %v132_v60, %v127_v59 }
 0x105   :  { %v128_v61 = vmul.f32 %v126_v54, %v122_v58 }
 0x107   :  { %v1137_v63 = vadd.f32 %v132_v60, %v128_v61 }
 0x109   :  { %v135_v1 = vpack.c.bf16 %v1137_v63, %v1135_v62 }
 0x10b   :  { %329 = vmatmul.mubr.bf16.vlgmr.msra.gmra.mrb[0].mxu0 %v135_v1  ;;  %731 = vmatmul.mubr.bf16.vlgmr.msra.gmra.mrb[0].mxu1 %v135_v1 }
 0x10c   :  { %736 = vmatprep.mubr.msk.bf16.mxu1 %vm990_vm0, %v988_v0  ;;  %762 = vmatprep.mubr.msk.bf16.mxu0 %vm990_vm0, %v988_v0 }
 0x10d   :  { %747 = vmatpush3.bf16.msra.mxu0 %v813_v33 }
 0x10e   :  { %748 = vmatprep.subr.bf16.mxu0 %v988_v0 }
 0x111   :  { %749 = vmatpush3.bf16.msra.mxu0 %v814_v34 }
 0x112   :  { %750 = vmatprep.subr.bf16.mxu0 %v988_v0 }
 0x115   :  { %751 = vmatpush3.bf16.msra.mxu0 %v815_v35 }
 0x116   :  { %752 = vmatprep.subr.bf16.mxu0 %v988_v0 }
 0x119   :  { %753 = vmatpush3.bf16.msra.mxu0 %v816_v36 }
 0x11a   :  { %754 = vmatprep.subr.bf16.mxu0 %v988_v0 }
 0x11d   :  { %755 = vmatpush3.bf16.msra.mxu0 %v817_v37 }
 0x11e   :  { %756 = vmatprep.subr.bf16.mxu0 %v988_v0 }
 0x121   :  { %757 = vmatpush3.bf16.msra.mxu0 %v818_v38 }
 0x122   :  { %758 = vmatprep.subr.bf16.mxu0 %v988_v0 }
 0x125   :  { %759 = vmatpush3.bf16.msra.mxu0 %v819_v39 }
 0x126   :  { %760 = vmatprep.subr.bf16.mxu0 %v988_v0 }
 0x129   :  { %761 = vmatpush3.bf16.msra.mxu0 %v820_v47 }
 0x1de   :  { %v330_v2 = vpop.f32.mrb[0].mxu0  ;;  %v373_v3 = vpop.f32.mrb[0].mxu1 }
 0x1df   :  { %v332_v4 = vpop.f32.mrb[1].mxu0  ;;  %v732_v5 = vpop.f32.mrb[1].mxu1 }
 0x1e0   :  { %v334_v6 = vpop.f32.mrb[2].mxu0  ;;  %v376_v7 = vpop.f32.mrb[2].mxu1 }
 0x1e1   :  { %v380_v8 = vpack.c.bf16 %v334_v6, %v330_v2  ;;  %v382_v9 = vpack.c.bf16 %v376_v7, %v373_v3  ;;  %v336_v10 = vpop.f32.mrb[3].mxu0  ;;  %v733_v11 = vpop.f32.mrb[3].mxu1 }
 0x1e2   :  { %v381_v12 = vpack.c.bf16 %v336_v10, %v332_v4 }
 0x1e4   :  { %735 = vmatpush3.bf16.xpose.msra.mxu1 %v381_v12 }
 0x1e5   :  { %740 = vmatprep.subr.bf16.mxu1 %v988_v0 }
 0x1eb   :  { %737 = vmatmul.mubr.bf16.vlgmr.msra.gmra.mrb[4].mxu1 %v380_v8 }
 0x1ec   :  { %741 = vmatpush3.bf16.msra.mxu1 %v382_v9  ;;  %742 = vmatprep.mubr.msk.bf16.mxu1 %vm990_vm0, %v988_v0 }
 0x2be   :  { %v419_v14 = vpop.f32.mrb[4].mxu1 }
 0x2bf   :  { %v420_v16 = vadd.f32 %v419_v14, %v383_v13  ;;  %v738_v17 = vpop.f32.mrb[5].mxu1  ;;  %v628_v13 = vsub.s32 2, %v1122_v48  ;;  %v634_v14 = vsub.s32 3, %v1122_v48 }
 0x2c0   :  { %v422_v18 = vpop.f32.mrb[6].mxu1 }
 0x2c1   :  { %v423_v19 = vadd.f32 %v422_v18, %v384_v15  ;;  %v739_v20 = vpop.f32.mrb[7].mxu1  ;;  %v427_v21 = vsel %vm426_vm1, %v420_v16, -inf }
 0x2c2   :  { %428 = vmax.xlane.f32.xlu0 %v427_v21  ;;  %v635_v20 = vrot.slane %v1128_v50, %v634_v14 }
 0x2c3   :  { %v430_v22 = vsel %vm426_vm1, %v423_v19, -inf }
 0x2c4   :  { %431 = vmax.xlane.f32.xlu1 %v430_v22 }
 0x34f   :  { %v429_v23 = vpop.xlane.xlu0 %428 }
 0x350   :  { %v433_v24 = vsub.f32 %v420_v16, %v429_v23  ;;  %v629_v16 = vrot.slane %v1128_v50, %v628_v13 }
 0x351   :  { %v432_v25 = vpop.xlane.xlu1 %431 }
 0x352   :  { %v435_v26 = vmul.f32 1.442695, %v433_v24  ;;  %v434_v27 = vsub.f32 %v423_v19, %v432_v25 }
 0x354   :  { %825 = vpow2.f32 %v435_v26  ;;  %v437_v28 = vmul.f32 1.442695, %v434_v27 }
 0x356   :  { %827 = vpow2.f32 %v437_v28 }
 0x35e   :  { %v826_v29 = vpop.eup %825 }
 0x35f   :  { %v439_v30 = vsel %vm426_vm1, %v826_v29, 0.0 }
 0x360   :  { %v828_v31 = vpop.eup %827  ;;  %440 = vadd.xlane.f32.xlu0 %v439_v30 }
 0x361   :  { %v442_v32 = vsel %vm426_vm1, %v828_v31, 0.0 }
 0x362   :  { %443 = vadd.xlane.f32.xlu1 %v442_v32 }
 0x3ed   :  { %v441_v40 = vpop.xlane.xlu0 %440 }
 0x3ee   :  { %829 = vrcp.f32 %v441_v40 }
 0x3ef   :  { %v444_v41 = vpop.xlane.xlu1 %443 }
 0x3f0   :  { %831 = vrcp.f32 %v444_v41 }
 0x3f8   :  { %v830_v42 = vpop.eup %829 }
 0x3f9   :  { %v447_v44 = vmul.f32 %v830_v42, %v826_v29 }
 0x3fa   :  { %v832_v43 = vpop.eup %831 }
 0x3fb   :  { %v448_v45 = vmul.f32 %v832_v43, %v828_v31 }
 0x3fd   :  { %v449_v46 = vpack.c.bf16 %v448_v45, %v447_v44 }
 0x3ff   :  { %743 = vmatmul.mubr.msk.bf16.vlgmr.msra.gmra.mrb[8].mxu1 %vm426_vm1, %v449_v46 }
 0x4d2   :  { %v487_v49 = vpop.f32.mrb[8].mxu1 }
 0x4d3   :  { %v744_v51 = vpop.f32.mrb[9].mxu1 }
 0x4d4   :  { %v490_v52 = vpop.f32.mrb[10].mxu1 }
 0x4d5   :  { %v494_v53 = vpack.c.bf16 %v490_v52, %v487_v49  ;;  %v745_v54 = vpop.f32.mrb[11].mxu1 }
 0x4d7   :  { %763 = vmatmul.mubr.bf16.vlgmr.msra.gmra.mrb[4].mxu0 %v494_v53 }
 0x5aa   :  { %v593_v0 = vpop.f32.mrb[4].mxu0 }
 0x5ab   :  { %v594_v55 = vadd.f32 %v593_v0, %v1135_v62  ;;  %v764_v56 = vpop.f32.mrb[5].mxu0 }
 0x5ac   :  { %v596_v57 = vpop.f32.mrb[6].mxu0 }
 0x5ad   :  { %v597_v58 = vadd.f32 %v596_v57, %v1137_v63  ;;  %600 = vadd.xlane.f32.xlu0 %v594_v55  ;;  %v765_v59 = vpop.f32.mrb[7].mxu0  ;;  %v606_v60 = vmul.f32 %v594_v55, %v594_v55 }
 0x5af   :  { %602 = vadd.xlane.f32.xlu1 %v597_v58  ;;  %v607_v61 = vmul.f32 %v597_v58, %v597_v58 }
 0x5b1   :  { %608 = vadd.xlane.f32.xlu0 %v606_v60 }
 0x5b3   :  { %610 = vadd.xlane.f32.xlu1 %v607_v61 }
 0x63a   :  { %v601_v1 = vpop.xlane.xlu0 %600 }
 0x63b   :  { %v604_v2 = vmul.f32 0.03125, %v601_v1 }
 0x63c   :  { %v603_v3 = vpop.xlane.xlu1 %602 }
 0x63d   :  { %v605_v4 = vmul.f32 0.03125, %v603_v3  ;;  %v614_v6 = vmul.f32 %v604_v2, %v604_v2  ;;  %v618_v15 = vsub.f32 %v594_v55, %v604_v2 }
 0x63e   :  { %v609_v5 = vpop.xlane.xlu0 %608 }
 0x63f   :  { %v612_v7 = vmul.f32 0.03125, %v609_v5  ;;  %v615_v62 = vmul.f32 %v605_v4, %v605_v4  ;;  %v619_v18 = vsub.f32 %v597_v58, %v605_v4 }
 0x640   :  { %v611_v8 = vpop.xlane.xlu1 %610 }
 0x641   :  { %v616_v9 = vsub.f32 %v612_v7, %v614_v6  ;;  %v613_v10 = vmul.f32 0.03125, %v611_v8 }
 0x643   :  { %v620_v11 = vadd.f32 1e-06, %v616_v9  ;;  %v617_v63 = vsub.f32 %v613_v10, %v615_v62 }
 0x645   :  { %833 = vrsqrt.f32 %v620_v11  ;;  %v621_v12 = vadd.f32 1e-06, %v617_v63 }
 0x647   :  { %835 = vrsqrt.f32 %v621_v12 }
 0x64f   :  { %v834_v17 = vpop.eup %833 }
 0x650   :  { %v624_v19 = vmul.f32 %v834_v17, %v618_v15 }
 0x651   :  { %v836_v21 = vpop.eup %835 }
 0x652   :  { %v625_v22 = vmul.f32 %v836_v21, %v619_v18  ;;  %v630_v23 = vmul.f32 %v629_v16, %v624_v19 }
 0x654   :  { %v631_v24 = vmul.f32 %v629_v16, %v625_v22  ;;  %v636_v25 = vadd.f32 %v635_v20, %v630_v23 }
 0x656   :  { %v637_v26 = vadd.f32 %v635_v20, %v631_v24  ;;  %638 = vst [vmem:[#allocation11] sm:$0xff] %v636_v25 }
 0x658   :  { %639 = vst [vmem:[#allocation11 + $0x8] sm:$0xff] %v637_v26 }
 0x659   :  { %958 = shalt.err (!%p955_p2)
}
 0x65a   :  { %s959_s16 = scalar_lea.hbm %s1187_s6, 256 }
 0x65b   :  { %p960_p3 = scmp.ne.s32.totalorder %s1187_s6, %s959_s16  ;;  %p963_p4 = scmp.lt.u32.totalorder %s959_s16, %s1187_s6 }
 0x65d   :  { %p965_p5 = pnand %p963_p4, %p960_p3 }
 0x65f   :  { %968 = shalt.err (!%p965_p5)
}
 0x660   :  { %651 = dma.vmem_to_hbm [thread:$0]  %s646_s12, 256, %s1187_s6, [#allocation4], %s982_s3, %s982_s3, %s983_s24  }
 0x661   :  { %975 = dma.done.wait [#allocation4], 256  }
 0x662   :  { %976 = vsyncadd [#allocation4], 4294967040 }
 0x663   :  { %655 = vsyncpa [#allocation3], 1 }
 0x664   :  { %656 = vsyncpa [#allocation6], 1 }
 0x665   :  { %657 = vsyncpa [#allocation9], 1 }
 0x666   :  { %658 = vsyncpa [#allocation4], 1 }

</bundles_post_ra>
